<compile_context>
chip_gen: v5e
topology: v5e:2x2
jax: 0.10.0
libtpu: 0.0.40
codegen_flags: <defaults>
</compile_context>

<pallas_src>
import math

import jax
import jax.numpy as jnp
from jax import lax
from jax.experimental import pallas as pl
from jax.experimental.pallas import tpu as pltpu


def _build_kernel(S, H, NH, DH, mask_mode, write_probs):
    """mask_mode: 'none' | 'dense' | 'causal'."""
    inv_sqrt = 1.0 / math.sqrt(DH)

    def kernel(*refs):
        i = 0
        hs_ref = refs[i]; i += 1
        mask_ref = None
        if mask_mode == "dense":
            mask_ref = refs[i]; i += 1
        w_ref = refs[i]; i += 1
        b_ref = refs[i]; i += 1
        fused_ref = refs[i]; i += 1
        probs_ref = refs[i] if write_probs else None

        # hidden_states arrives f32; bf16 convert happens here (free VPU slot).
        x = hs_ref[0].astype(jnp.bfloat16)                     # (S, H)
        xb = jnp.broadcast_to(x, (NH, S, H))                   # head-batched LHS

        # One head-batched MXU pass over all 5 projections:
        #   (NH, S, H) @ (NH, H, 5*DH) -> (NH, S, 5*DH), f32 accumulate + bias.
        proj = lax.dot_general(
            xb, w_ref[...], (((2,), (1,)), ((0,), (0,))),
            preferred_element_type=jnp.float32) + b_ref[...]

        k_f = proj[:, :, 0 * DH:1 * DH]                        # key_layer   (first=True)
        q_f = proj[:, :, 1 * DH:2 * DH]                        # query_layer (first=True)
        v_b = proj[:, :, 4 * DH:5 * DH].astype(jnp.bfloat16)   # value heads

        # fold 1/sqrt(DH) into Q; contract head_dim directly (no K transpose).
        qb = (q_f * inv_sqrt).astype(jnp.bfloat16)
        kb = k_f.astype(jnp.bfloat16)
        scores = jnp.einsum("hqd,hkd->hqk", qb, kb,
                            preferred_element_type=jnp.float32)  # (NH, S, S) f32

        if mask_mode == "dense":
            scores = scores + mask_ref[0, 0]                     # broadcast over heads
        elif mask_mode == "causal":
            rows = lax.broadcasted_iota(jnp.int32, (S, S), 0)
            cols = lax.broadcasted_iota(jnp.int32, (S, S), 1)
            scores = scores + jnp.where(cols <= rows,
                                        jnp.float32(0.0), jnp.float32(-1e9))

        m = jnp.max(scores, axis=-1, keepdims=True)
        e = jnp.exp(scores - m)
        denom = jnp.sum(e, axis=-1, keepdims=True)
        if write_probs:
            p = e / denom                                # exact: probs leave the kernel
        else:
            p = e * pl.reciprocal(denom, approx=True)    # EUP slot; probs stay internal

        ctx = jnp.einsum("hqk,hkd->hqd", p.astype(jnp.bfloat16), v_b,
                         preferred_element_type=jnp.float32)     # (NH, S, DH)

        # Single fused lane-dense store: [key | query | queryO | keyO | context].
        fused_ref[0] = jnp.concatenate(
            [proj[:, :, :4 * DH], ctx], axis=-1).astype(fused_ref.dtype)
        if write_probs:
            probs_ref[0] = p.astype(probs_ref.dtype)     # single store, no stack

    return kernel


def prepare_params(params, num_heads):
    """Pack the 5 (H, H) projections into head-major fused tensors ONCE."""
    H = params["query_w"].shape[0]
    NH = num_heads
    DH = H // NH
    names = ("key", "query", "queryO", "keyO", "value")   # lane order per head
    ws, bs = [], []
    for n in names:
        # (H_in, H_out) -> (H_in, NH, DH) -> (NH, H_in, DH)
        ws.append(params[n + "_w"].reshape(H, NH, DH).transpose(1, 0, 2))
        bs.append(params[n + "_b"].reshape(NH, DH))
    w_heads = jnp.concatenate(ws, axis=-1).astype(jnp.bfloat16)            # (NH, H, 5DH)
    b_heads = jnp.concatenate(bs, axis=-1).reshape(NH, 1, 5 * DH).astype(jnp.float32)
    return {"w_heads": w_heads, "b_heads": b_heads,
            "hidden_size": H, "num_heads": NH}


def _vmem_limit_bytes(S, H, NH, DH, dense_mask, write_probs, probs_itemsize):
    f5 = 5 * DH
    in_b = S * H * 4 + NH * H * f5 * 2 + NH * f5 * 4
    if dense_mask:
        in_b += S * S * 4
    out_b = NH * S * f5 * 4
    if write_probs:
        out_b += NH * S * S * probs_itemsize
    # in-body intermediates (single copies, conservative):
    interm = (NH * S * H * 2           # broadcast bf16 lhs
              + 2 * NH * S * f5 * 4    # proj + fused concat result
              + 3 * NH * S * DH * 2    # q/k/v bf16 copies
              + 3 * NH * S * S * 4     # scores / exp / probs
              + NH * S * DH * 4)       # ctx
    need = 2 * (in_b + out_b) + interm + (4 << 20)   # + Mosaic internal scratch
    phys = None
    try:
        info = pltpu.get_tpu_info()
        for name in ("vmem_capacity_bytes", "vmem_size_bytes"):
            phys = getattr(info, name, None)
            if phys:
                break
    except Exception:
        phys = None
    # generation-aware cap with headroom: ~51 MiB on v7x, ~102 MiB on v5e/v6e.
    cap = int(phys * 0.8) if phys else (48 << 20)
    return int(min(max(need, 32 << 20), cap))


def self_attention_forward(hidden_states, prepared, attention_mask=None,
                           causal=False, output_attentions=True,
                           probs_dtype=jnp.float32):
    B, S, H = hidden_states.shape
    NH = prepared["num_heads"]
    DH = H // NH
    assert NH * DH == H and prepared["hidden_size"] == H
    write_probs = bool(output_attentions)
    if attention_mask is not None and causal:
        raise ValueError("pass either attention_mask or causal=True, not both")
    mask_mode = ("dense" if attention_mask is not None
                 else ("causal" if causal else "none"))

    kernel = _build_kernel(S, H, NH, DH, mask_mode, write_probs)

    in_specs = [pl.BlockSpec((1, S, H), lambda b: (b, 0, 0))]
    args = [hidden_states.astype(jnp.float32)]   # no wrapper bf16 cast
    if mask_mode == "dense":
        m = jnp.asarray(attention_mask, jnp.float32)
        m = jnp.broadcast_to(m, jnp.broadcast_shapes(m.shape, (1, 1, S, S)))
        if m.ndim != 4 or m.shape[1] != 1 or m.shape[0] not in (1, B):
            raise NotImplementedError("mask must broadcast to (B, 1, S, S)")
        if m.shape[0] == 1:
            in_specs.append(pl.BlockSpec((1, 1, S, S), lambda b: (0, 0, 0, 0)))
        else:
            in_specs.append(pl.BlockSpec((1, 1, S, S), lambda b: (b, 0, 0, 0)))
        args.append(m)
    in_specs += [
        pl.BlockSpec((NH, H, 5 * DH), lambda b: (0, 0, 0)),   # fused head-major weight
        pl.BlockSpec((NH, 1, 5 * DH), lambda b: (0, 0, 0)),   # fused head-major bias
    ]
    args += [prepared["w_heads"], prepared["b_heads"]]

    out_specs = [pl.BlockSpec((1, NH, S, 5 * DH), lambda b: (b, 0, 0, 0))]
    out_shape = [jax.ShapeDtypeStruct((B, NH, S, 5 * DH), jnp.float32)]
    if write_probs:
        out_specs.append(pl.BlockSpec((1, NH, S, S), lambda b: (b, 0, 0, 0)))
        out_shape.append(jax.ShapeDtypeStruct((B, NH, S, S), probs_dtype))

    vmem_limit = _vmem_limit_bytes(S, H, NH, DH, mask_mode == "dense",
                                   write_probs, jnp.dtype(probs_dtype).itemsize)

    results = pl.pallas_call(
        kernel,
        out_shape=tuple(out_shape),
        grid_spec=pltpu.PrefetchScalarGridSpec(
            num_scalar_prefetch=0,
            grid=(B,),
            in_specs=in_specs,
            out_specs=out_specs,
        ),
        compiler_params=pltpu.CompilerParams(
            dimension_semantics=("parallel",),
            vmem_limit_bytes=vmem_limit,
        ),
    )(*args)

    if write_probs:
        fused, probs = results
    else:
        fused = results[0] if isinstance(results, (tuple, list)) else results
        probs = None

    # split the fused slab in the wrapper (free layout plumbing)
    key_layer   = fused[:, :, :, 0 * DH:1 * DH]        # (B, NH, S, DH)
    query_layer = fused[:, :, :, 1 * DH:2 * DH]
    queryO      = fused[:, :, :, 2 * DH:3 * DH]
    keyO        = fused[:, :, :, 3 * DH:4 * DH]
    context = fused[:, :, :, 4 * DH:5 * DH].transpose(0, 2, 1, 3).reshape(B, S, H)

    outputs = (context, probs) if output_attentions else (context,)
    return (outputs, keyO, queryO, key_layer, query_layer)


def init_params(key, hidden_size):
    names = ["query", "key", "value", "queryO", "keyO"]
    params = {}
    keys = jax.random.split(key, 2 * len(names))
    for i, name in enumerate(names):
        params[name + "_w"] = 0.02 * jax.random.normal(
            keys[2 * i], (hidden_size, hidden_size), jnp.float32)
        params[name + "_b"] = 0.01 * jax.random.normal(
            keys[2 * i + 1], (hidden_size,), jnp.float32)
    return params


def _reference_forward(hs, params, mask, num_heads):
    # pure-JAX f32 reference mirroring the torch forward (first=True path)
    B, S, H = hs.shape
    DH = H // num_heads

    def lin(w, b):
        return hs @ w + b

    def heads(y):
        return y.reshape(B, S, num_heads, DH).transpose(0, 2, 1, 3)

    q = heads(lin(params["query_w"], params["query_b"]))
    k = heads(lin(params["key_w"], params["key_b"]))
    v = heads(lin(params["value_w"], params["value_b"]))
    qo = heads(lin(params["queryO_w"], params["queryO_b"]))
    ko = heads(lin(params["keyO_w"], params["keyO_b"]))
    scores = jnp.einsum("bhqd,bhkd->bhqk", q, k) / math.sqrt(DH)
    if mask is not None:
        scores = scores + mask
    probs = jax.nn.softmax(scores, axis=-1)
    ctx = jnp.einsum("bhqk,bhkd->bhqd", probs, v).transpose(0, 2, 1, 3).reshape(B, S, H)
    return ctx, probs, ko, qo, k, q


if __name__ == "__main__":
    B, S, H, NH = 2, 8, 32, 4   # batch, seq, hidden, num_heads (head_dim = 8)

    root = jax.random.PRNGKey(0)
    k_hs, k_params = jax.random.split(root)
    hidden_states = jax.random.normal(k_hs, (B, S, H), jnp.float32)
    params = init_params(k_params, H)
    prepared = prepare_params(params, NH)   # fused head-major weights built ONCE

    # --- variant 1: no mask, output_attentions=True ---
    (outputs, keyO, queryO, key_layer, query_layer) = self_attention_forward(
        hidden_states, prepared, attention_mask=None, output_attentions=True)
    context, attention_probs = outputs
    jax.block_until_ready(context)
    jax.block_until_ready(attention_probs)

    r_ctx, r_probs, r_ko, r_qo, r_k, r_q = _reference_forward(
        hidden_states, params, None, NH)
    # bf16 matmuls -> loosened tolerance vs the f32 reference
    for got, want in [(context, r_ctx), (attention_probs, r_probs),
                      (keyO, r_ko), (queryO, r_qo),
                      (key_layer, r_k), (query_layer, r_q)]:
        assert got.shape == want.shape, "shape mismatch vs reference"
        assert jnp.allclose(got, want, atol=2e-2, rtol=2e-2), "mismatch vs reference"

    # --- variant 2: dense additive mask (B,1,S,S), output_attentions=False ---
    neg = jnp.float32(-1e9)
    causal_mask = jnp.where(jnp.tril(jnp.ones((S, S), bool)), 0.0, neg).astype(jnp.float32)
    mask = jnp.broadcast_to(causal_mask[None, None], (B, 1, S, S))
    (outputs2, *_rest2) = self_attention_forward(
        hidden_states, prepared, attention_mask=mask, output_attentions=False)
    (context2,) = outputs2
    jax.block_until_ready(context2)
    r_ctx2, *_ = _reference_forward(hidden_states, params, causal_mask[None, None], NH)
    assert jnp.allclose(context2, r_ctx2, atol=2e-2, rtol=2e-2), "masked mismatch"

    # --- variant 3: in-kernel causal mask (no dense (S,S) mask DMA) ---
    (outputs3, *_rest3) = self_attention_forward(
        hidden_states, prepared, causal=True, output_attentions=True)
    context3, probs3 = outputs3
    jax.block_until_ready(context3)
    r_ctx3, r_probs3, *_ = _reference_forward(
        hidden_states, params, causal_mask[None, None], NH)
    assert jnp.allclose(context3, r_ctx3, atol=2e-2, rtol=2e-2), "causal ctx mismatch"
    assert jnp.allclose(probs3, r_probs3, atol=2e-2, rtol=2e-2), "causal probs mismatch"

    print("KERNEL_OK")
</pallas_src>

<mosaic_0001>
module attributes {stable_mosaic.version = 11 : i64} {
  func.func @kernel(%arg0: i32, %arg1: memref<1x8x32xf32, #tpu.memory_space<vmem>>, %arg2: memref<4x32x40xbf16, #tpu.memory_space<vmem>>, %arg3: memref<4x1x40xf32, #tpu.memory_space<vmem>>, %arg4: memref<1x4x8x40xf32, #tpu.memory_space<vmem>>, %arg5: memref<1x4x8x8xf32, #tpu.memory_space<vmem>>) attributes {dimension_semantics = [#tpu.dimension_semantics<parallel>], iteration_bounds = array<i64: 2>, scalar_prefetch = 0 : i64, scratch_operands = 0 : i64, tpu.core_type = #tpu.core_type<tc>, window_params = [{transform_indices = @transform_0, window_bounds = array<i64: 1, 8, 32>}, {pipeline_mode = #tpu.pipeline_mode<synchronous>, transform_indices = @transform_1, window_bounds = array<i64: 4, 32, 40>}, {pipeline_mode = #tpu.pipeline_mode<synchronous>, transform_indices = @transform_2, window_bounds = array<i64: 4, 1, 40>}, {transform_indices = @transform_3, window_bounds = array<i64: 1, 4, 8, 40>}, {transform_indices = @transform_4, window_bounds = array<i64: 1, 4, 8, 8>}]} {
    %c0 = arith.constant 0 : index
    %c0_0 = arith.constant 0 : index
    %c0_1 = arith.constant 0 : index
    %0 = vector.load %arg1[%c0, %c0_0, %c0_1] : memref<1x8x32xf32, #tpu.memory_space<vmem>>, vector<1x8x32xf32>
    %1 = vector.shape_cast %0 : vector<1x8x32xf32> to vector<8x32xf32>
    %2 = arith.truncf %1 : vector<8x32xf32> to vector<8x32xbf16>
    %3 = vector.shape_cast %2 : vector<8x32xbf16> to vector<1x8x32xbf16>
    %4 = vector.broadcast %3 : vector<1x8x32xbf16> to vector<4x8x32xbf16>
    %c0_2 = arith.constant 0 : index
    %c0_3 = arith.constant 0 : index
    %c0_4 = arith.constant 0 : index
    %5 = vector.load %arg2[%c0_2, %c0_3, %c0_4] : memref<4x32x40xbf16, #tpu.memory_space<vmem>>, vector<4x32x40xbf16>
    %cst = arith.constant dense<0.000000e+00> : vector<4x8x40xf32>
    %6 = tpu.matmul %4, %5, %cst {dimension_numbers = #tpu.dot_dimension_numbers<[2], [1], [1], [2], [0, 0, 0, 1, 1, 2], [0], [0]>} : vector<4x8x32xbf16>, vector<4x32x40xbf16>, vector<4x8x40xf32> -> vector<4x8x40xf32>
    %c0_5 = arith.constant 0 : index
    %c0_6 = arith.constant 0 : index
    %c0_7 = arith.constant 0 : index
    %7 = vector.load %arg3[%c0_5, %c0_6, %c0_7] : memref<4x1x40xf32, #tpu.memory_space<vmem>>, vector<4x1x40xf32>
    %8 = vector.broadcast %7 : vector<4x1x40xf32> to vector<4x8x40xf32>
    %9 = arith.addf %6, %8 : vector<4x8x40xf32>
    %10 = vector.extract_strided_slice %9 {offsets = [0, 0, 0], sizes = [4, 8, 8], strides = [1, 1, 1]} : vector<4x8x40xf32> to vector<4x8x8xf32>
    %11 = vector.extract_strided_slice %9 {offsets = [0, 0, 8], sizes = [4, 8, 8], strides = [1, 1, 1]} : vector<4x8x40xf32> to vector<4x8x8xf32>
    %12 = vector.extract_strided_slice %9 {offsets = [0, 0, 32], sizes = [4, 8, 8], strides = [1, 1, 1]} : vector<4x8x40xf32> to vector<4x8x8xf32>
    %13 = arith.truncf %12 : vector<4x8x8xf32> to vector<4x8x8xbf16>
    %cst_8 = arith.constant 0.353553385 : f32
    %14 = vector.broadcast %cst_8 : f32 to vector<4x8x8xf32>
    %15 = arith.mulf %11, %14 : vector<4x8x8xf32>
    %16 = arith.truncf %15 : vector<4x8x8xf32> to vector<4x8x8xbf16>
    %17 = arith.truncf %10 : vector<4x8x8xf32> to vector<4x8x8xbf16>
    "tpu.trace_start"() <{level = 10 : i32, message = "hqd,hkd->hqk"}> : () -> ()
    %cst_9 = arith.constant dense<0.000000e+00> : vector<4x8x8xf32>
    %18 = tpu.matmul %16, %17, %cst_9 {dimension_numbers = #tpu.dot_dimension_numbers<[2], [2], [1], [1], [0, 0, 0, 1, 1, 1], [0], [0]>} : vector<4x8x8xbf16>, vector<4x8x8xbf16>, vector<4x8x8xf32> -> vector<4x8x8xf32>
    "tpu.trace_stop"() : () -> ()
    %cst_10 = arith.constant dense<0xFF800000> : vector<4x8xf32>
    %19 = vector.multi_reduction <maximumf>, %18, %cst_10 [2] : vector<4x8x8xf32> to vector<4x8xf32>
    %20 = vector.shape_cast %19 : vector<4x8xf32> to vector<4x8x1xf32>
    %21 = vector.broadcast %20 : vector<4x8x1xf32> to vector<4x8x8xf32>
    %22 = arith.subf %18, %21 : vector<4x8x8xf32>
    %23 = math.exp %22 : vector<4x8x8xf32>
    %cst_11 = arith.constant dense<0.000000e+00> : vector<4x8xf32>
    %24 = vector.multi_reduction <add>, %23, %cst_11 [2] : vector<4x8x8xf32> to vector<4x8xf32>
    %25 = vector.shape_cast %24 : vector<4x8xf32> to vector<4x8x1xf32>
    %26 = vector.broadcast %25 : vector<4x8x1xf32> to vector<4x8x8xf32>
    %27 = arith.divf %23, %26 : vector<4x8x8xf32>
    %28 = arith.truncf %27 : vector<4x8x8xf32> to vector<4x8x8xbf16>
    "tpu.trace_start"() <{level = 10 : i32, message = "hqk,hkd->hqd"}> : () -> ()
    %cst_12 = arith.constant dense<0.000000e+00> : vector<4x8x8xf32>
    %29 = tpu.matmul %28, %13, %cst_12 {dimension_numbers = #tpu.dot_dimension_numbers<[2], [1], [1], [2], [0, 0, 0, 1, 1, 2], [0], [0]>} : vector<4x8x8xbf16>, vector<4x8x8xbf16>, vector<4x8x8xf32> -> vector<4x8x8xf32>
    "tpu.trace_stop"() : () -> ()
    %30 = vector.extract_strided_slice %9 {offsets = [0, 0, 0], sizes = [4, 8, 32], strides = [1, 1, 1]} : vector<4x8x40xf32> to vector<4x8x32xf32>
    %31 = tpu.concatenate %30, %29 in 2 : vector<4x8x32xf32>, vector<4x8x8xf32> -> vector<4x8x40xf32>
    %c0_13 = arith.constant 0 : index
    %c0_14 = arith.constant 0 : index
    %c0_15 = arith.constant 0 : index
    %c0_16 = arith.constant 0 : index
    %32 = vector.load %arg4[%c0_13, %c0_14, %c0_15, %c0_16] : memref<1x4x8x40xf32, #tpu.memory_space<vmem>>, vector<1x4x8x40xf32>
    %33 = vector.shape_cast %32 : vector<1x4x8x40xf32> to vector<4x8x40xf32>
    %34 = vector.shape_cast %31 : vector<4x8x40xf32> to vector<1x4x8x40xf32>
    tpu.vector_store %arg4[%c0_13, %c0_14, %c0_15, %c0_16], %34 {strides = array<i32>} : memref<1x4x8x40xf32, #tpu.memory_space<vmem>>, vector<1x4x8x40xf32>,
    %c0_17 = arith.constant 0 : index
    %c0_18 = arith.constant 0 : index
    %c0_19 = arith.constant 0 : index
    %c0_20 = arith.constant 0 : index
    %35 = vector.load %arg5[%c0_17, %c0_18, %c0_19, %c0_20] : memref<1x4x8x8xf32, #tpu.memory_space<vmem>>, vector<1x4x8x8xf32>
    %36 = vector.shape_cast %35 : vector<1x4x8x8xf32> to vector<4x8x8xf32>
    %37 = vector.shape_cast %27 : vector<4x8x8xf32> to vector<1x4x8x8xf32>
    tpu.vector_store %arg5[%c0_17, %c0_18, %c0_19, %c0_20], %37 {strides = array<i32>} : memref<1x4x8x8xf32, #tpu.memory_space<vmem>>, vector<1x4x8x8xf32>,
    return
  }
  func.func @transform_0(%arg0: i32) -> (i32, i32, i32) {
    %c0_i32 = arith.constant 0 : i32
    %c0_i32_0 = arith.constant 0 : i32
    %c0_i32_1 = arith.constant 0 : i32
    return %arg0, %c0_i32, %c0_i32_0 : i32, i32, i32
  }
  func.func @transform_1(%arg0: i32) -> (i32, i32, i32) {
    %c0_i32 = arith.constant 0 : i32
    %c0_i32_0 = arith.constant 0 : i32
    %c0_i32_1 = arith.constant 0 : i32
    %c0_i32_2 = arith.constant 0 : i32
    return %c0_i32, %c0_i32_0, %c0_i32_1 : i32, i32, i32
  }
  func.func @transform_2(%arg0: i32) -> (i32, i32, i32) {
    %c0_i32 = arith.constant 0 : i32
    %c0_i32_0 = arith.constant 0 : i32
    %c0_i32_1 = arith.constant 0 : i32
    %c0_i32_2 = arith.constant 0 : i32
    return %c0_i32, %c0_i32_0, %c0_i32_1 : i32, i32, i32
  }
  func.func @transform_3(%arg0: i32) -> (i32, i32, i32, i32) {
    %c0_i32 = arith.constant 0 : i32
    %c0_i32_0 = arith.constant 0 : i32
    %c0_i32_1 = arith.constant 0 : i32
    %c0_i32_2 = arith.constant 0 : i32
    return %arg0, %c0_i32, %c0_i32_0, %c0_i32_1 : i32, i32, i32, i32
  }
  func.func @transform_4(%arg0: i32) -> (i32, i32, i32, i32) {
    %c0_i32 = arith.constant 0 : i32
    %c0_i32_0 = arith.constant 0 : i32
    %c0_i32_1 = arith.constant 0 : i32
    %c0_i32_2 = arith.constant 0 : i32
    return %arg0, %c0_i32, %c0_i32_0, %c0_i32_1 : i32, i32, i32, i32
  }
}

</mosaic_0001>

<bundles_post_ra>
// kernel: tpu_custom_call.1
= control target key start
LH: loop header
LB: loop body
LE: loop exit
PB: predicated region body
PF: predicated region fallthrough
CT: control target
= control target key end

     0   :  { %10 = vsyncpa [#allocation3], 0  ;;  %s1575_s0 = inlined_call_operand.hbm [shape: f32[2,8,32], index: 0, kind: input, shape index: {}]   ;;  %s1576_s1 = inlined_call_operand.hbm [shape: bf16[4,32,40], index: 1, kind: input, shape index: {}]   ;;  %s1577_s2 = inlined_call_operand.hbm [shape: f32[4,1,40], index: 2, kind: input, shape index: {}]   ;;  %s1578_s3 = inlined_call_operand.hbm [shape: f32[2,4,8,40], index: 3, kind: output, shape index: {0}]   ;;  %s1579_s4 = inlined_call_operand.hbm [shape: f32[2,4,8,8], index: 4, kind: output, shape index: {1}]  }
   0x1   :  { %12 = vsyncpa [#allocation3 + $0x1], 0 }
   0x2   :  { %13 = vsyncpa [#allocation6], 0 }
   0x3   :  { %14 = vsyncpa [#allocation4], 0 }
   0x4   :  { %16 = vsyncpa [#allocation4 + $0x1], 0 }
   0x5   :  { %17 = vsyncpa [#allocation10], 0 }
   0x6   :  { %19 = vsyncpa [#allocation10 + $0x1], 0  ;;  %s1302_s15 = smov 0   ;;  %s1304_s16 = smov 0  }
   0x7   :  { %s1306_s17 = smov 0   ;;  %s1308_s18 = smov 0  }
   0x8 LB: > { %s161_s21 = sshll.u32 %s1576_s1, 4  ;;  %s1326_s22 = sadd.s32 4294967295, %s1264_s18   ;;  %s1264_s18 = sphi %s1308_s18, %s1590_s18   ;;  %s1260_s17 = sphi %s1306_s17, %s1589_s17   ;;  %s1256_s16 = sphi %s1304_s16, %s1588_s16   ;;  %s1252_s15 = sphi %s1302_s15, %s1587_s15   ;;  %s162_s21 = int_to_ptr.hbm [resolvable:$true] %s161_s21 }
   0x9   : > { %p897_p0 = scmp.ge.s32.totalorder %s1264_s18, 1  ;;  %p46_p1 = scmp.eq.s32.totalorder %s1326_s22, 0 }
   0xa   : > { %p150_p2 = scmp.lt.s32.totalorder %s1264_s18, 3  ;;  %s1266_s24 = smov [#allocation5]  }
   0xb   : > { %s163_s25 = sshll.u32 %s1266_s24, 4  ;;  %s175_s28 = sshll.u32 %s1577_s2, 4  ;;  %s164_s25 = int_to_ptr.vmem [resolvable:$true] %s163_s25  ;;  %s176_s28 = int_to_ptr.hbm [resolvable:$true] %s175_s28 }
   0xc   : > { %p1331_p3 = pnand %p897_p0, %p150_p2  ;;  %s1267_s29 = smov [#allocation7]  }
   0xd   : > { %s177_s30 = sshll.u32 %s1267_s29, 4  ;;  %s1268_s5 = smov 64   ;;  %s178_s30 = int_to_ptr.vmem [resolvable:$true] %s177_s30 }
   0xe   : > { %p985_p4 = pneg %p1331_p3  ;;  %s1269_s6 = smov 4  }
   0xf   : > { %s1270_s7 = smov 16   ;;  %s1271_s8 = smov 1  }
  0x10   : > { %p986_p6 = pnand %p985_p4, %p46_p1  ;;  %s896_s9 = sadd.s32 4294967294, %s1264_s18  }
  0x11   : > { %s1345_s10 = sadd.s32 1, %s1264_s18   ;;  %s32_s12 = sadd.s32 1, %s1260_s17 }
  0x12   : > { %988 = dma.hbm_to_vmem [thread:$0]  (!%p986_p6), %s162_s21, 1024, %s164_s25, [#allocation6], %s1268_s5, %s1268_s5, %s1269_s6  }
  0x13   : > { %991 = dma.hbm_to_vmem [thread:$0]  (!%p986_p6), %s176_s28, 64, %s178_s30, [#allocation6], %s1270_s7, %s1270_s7, %s1271_s8  }
  0x14   : > { %s29_s11 = ssub.s32 %s1264_s18, %s1345_s10  ;;  %p39_p8 = scmp.ne.s32.totalorder %s1260_s17, %s1256_s16 }
  0x15   : > { %p30_p7 = scmp.eq.s32.totalorder %s29_s11, 0  ;;  %p40_p9 = scmp.eq.s32.totalorder %s1264_s18, 0 }
  0x16   : > { %p45_p10 = scmp.ne.s32.totalorder %s1256_s16, %s1252_s15  ;;  %p111_p13 = scmp.eq.s32.totalorder %s1326_s22, 1 }
  0x17   : > { %s1356_s13 = scalar_select %p30_p7, %s1260_s17, %s32_s12  }
  0x18   : > { %p1358_p11 = por %p40_p9, %p39_p8  ;;  %p1364_p12 = por %p46_p1, %p45_p10 }
  0x19   : > { %p117_p0 = scmp.eq.s32.totalorder %s896_s9, 1  ;;  %p1005_p2 = scmp.lt.s32.totalorder %s1264_s18, 2 }
  0x1a   : > { %s191_s20 = sand.u32 1, %s1260_s17   ;;  %p1371_p4 = por %p111_p13, %p39_p8 }
  0x1b   : > { %p1375_p6 = por %p117_p0, %p45_p10  ;;  %s901_s25 = sshll.u32 %s191_s20, 3 }
  0x1c   : > { %s902_s26 = sshll.u32 %s1264_s18, 3  ;;  %s195_s30 = scalar_lea.vmem [#allocation2], %s901_s25 }
  0x1d   : > { %s199_s29 = scalar_lea.hbm %s1575_s0, %s902_s26  ;;  %s203_s5 = sshll.u32 %s195_s30, 4  ;;  %s204_s5 = int_to_ptr.vmem [resolvable:$true] %s203_s5 }
  0x1e   : > { %s201_s6 = sshll.u32 %s199_s29, 4  ;;  %p1385_p7 = pnand %p1005_p2, %p1358_p11  ;;  %s202_s6 = int_to_ptr.hbm [resolvable:$true] %s201_s6 }
  0x1f   : > { %s192_s8 = scalar_lea.sflag [#allocation3], %s191_s20  ;;  %s1132_s9 = sshra.s32 %s202_s6, 4  ;;  %s1133_s9 = int_to_ptr.hbm [resolvable:$true] %s1132_s9 }
  0x20   : > { %s1134_s11 = scalar_lea.hbm %s1133_s9, 8  ;;  %p1136_p9 = pneg %p1385_p7 }
  0x21   : > { %p1135_p8 = scmp.ne.s32.totalorder %s1133_s9, %s1134_s11  ;;  %s1139_s26 = scalar_lea.hbm %s1575_s0, 16 }
  0x22   : > { %p1140_p11 = scmp.lt.s32.totalorder %s1133_s9, %s1575_s0  ;;  %p1141_p0 = scmp.lt.s32.totalorder %s1139_s26, %s1134_s11 }
  0x23   : > { %p1137_p10 = pnand %p1136_p9, %p1135_p8 }
  0x24   : > { %p1142_p2 = por %p1141_p0, %p1140_p11 }
  0x25   : > { %p1138_p13 = pneg %p1137_p10 }
  0x27   : > { %p1143_p5 = pnand %p1142_p2, %p1138_p13 }
  0x29   : > { %1146 = shalt.err (!%p1143_p5)
}
  0x2a   : > { %995 = dma.hbm_to_vmem [thread:$0]  (!%p1385_p7), %s202_s6, 128, %s204_s5, %s192_s8  }
  0x2b   : > { %212 = sbr.rel (%p1331_p3) target bundleno = 977 (0x3d1), region = 32  ;;  %s1402_s20 = sand.u32 (!%p1331_p3), 1, %s1256_s16  }
  0x2c   : > { %s904_s28 = sshll.u32 (!%p1331_p3), %s1402_s20, 3  ;;  %s215_s29 = scalar_lea.sflag (!%p1331_p3), [#allocation3], %s1402_s20 }
  0x2d   : > { %s218_s30 = scalar_lea.vmem (!%p1331_p3), [#allocation2], %s904_s28 }
  0x30   : > { %1235 = dma.done.wait (%p1364_p12), %s215_s29, 128  }
  0x31   : > { %1237 = vsyncadd (%p1364_p12), %s215_s29, 4294967168 }
  0x32   : > { %1239 = dma.done.wait (%p46_p1), [#allocation6], 1088  }
  0x33   : > { %1241 = vsyncadd (%p46_p1), [#allocation6], 4294966208  ;;  %v962_v0 = vld [vmem:[#allocation5 + $0x8] sm:$0xff]  ;;  %v964_v1 = vld [vmem:[#allocation5 + $0x18] sm:$0xff]  ;;  %vm306_vm0 = vcmask 261120   ;;  %vm415_vm1 = vcmask 64512  }
  0x34   : > { %v966_v2 = vld [vmem:[#allocation5 + $0x28] sm:$0xff]  ;;  %v961_v3 = vld [vmem:[#allocation5] sm:$0xff]  ;;  %316 = vmatpush.bf16.msra.mxu0 %v962_v0  ;;  %341 = vmatpush.bf16.msra.mxu1 %v964_v1  ;;  %v963_v4 = vld [vmem:[#allocation5 + $0x10] sm:$0xff]  ;;  %s1272_s23 = smov 120   ;;  %s1273_s19 = smov 96   ;;  %vm615_vm2 = vcmask 1043456  }
  0x35   : > { %v968_v5 = vld [vmem:[#allocation5 + $0x38] sm:$0xff]  ;;  %366 = vmatpush.bf16.msra.mxu2 %v966_v2  ;;  %v965_v7 = vld [vmem:[#allocation5 + $0x20] sm:$0xff]  ;;  %v967_v8 = vld [vmem:[#allocation5 + $0x30] sm:$0xff]  ;;  %s907_s5 = sshll.u32 %s1402_s20, 5  ;;  %s1274_s7 = smov 32  }
  0x36   : > { %v260_v6 = vld [vmem:[%s218_s30] sm:$0xff]  ;;  %391 = vmatpush.bf16.msra.mxu3 %v968_v5  ;;  %v1052_v10 = vld [vmem:[#allocation7] ss:$0 sm:$0xff]  ;;  %v1053_v11 = vld [vmem:[#allocation7 + $0x1] ss:$0 sm:$0xff]  ;;  %s1481_s6 = scalar_lea.vmem [#allocation9], %s907_s5 }
  0x37   : > { %v261_v9 = vpack.c.bf16 %v260_v6, %v260_v6  ;;  %v1054_v20 = vld [vmem:[#allocation7 + $0x2] ss:$0 sm:$0xff]  ;;  %v1055_v24 = vld [vmem:[#allocation7 + $0x3] ss:$0 sm:$0xff]  ;;  %s768_s8 = sshll.u32 %s1481_s6, 4  ;;  %s969_s9 = sshll.u32 %s1326_s22, 5  ;;  %s769_s8 = int_to_ptr.vmem [resolvable:$true] %s768_s8 }
  0x38   : > { %317 = vmatpush.bf16.msra.mxu0 %v961_v3  ;;  %342 = vmatpush.bf16.msra.mxu1 %v963_v4  ;;  %s767_s25 = scalar_lea.hbm %s1579_s4, %s969_s9  ;;  %s739_s27 = scalar_lea.sflag [#allocation10], %s1402_s20 }
  0x39   : > { %367 = vmatpush.bf16.msra.mxu2 %v965_v7  ;;  %s770_s26 = sshll.u32 %s767_s25, 4  ;;  %s771_s26 = int_to_ptr.hbm [resolvable:$true] %s770_s26 }
  0x3a   : > { %392 = vmatpush.bf16.msra.mxu3 %v967_v8  ;;  %s1176_s14 = sshra.s32 %s771_s26, 4  ;;  %s1177_s14 = int_to_ptr.hbm [resolvable:$true] %s1176_s14 }
  0x3b   : > { %917 = vmatmul.msk.bf16.vlgmr.msra.gmra.mxu0 %vm306_vm0, %v261_v9  ;;  %926 = vmatmul.msk.bf16.vlgmr.msra.gmra.mxu1 %vm306_vm0, %v261_v9  ;;  %s1178_s28 = scalar_lea.hbm %s1177_s14, 32  ;;  %p1183_p12 = scmp.lt.s32.totalorder %s1177_s14, %s1579_s4 }
  0x3c   : > { %935 = vmatmul.msk.bf16.vlgmr.msra.gmra.mxu2 %vm306_vm0, %v261_v9  ;;  %p1179_p1 = scmp.ne.s32.totalorder %s1177_s14, %s1178_s28 }
  0x3d   : > { %944 = vmatmul.msk.bf16.vlgmr.msra.gmra.mxu3 %vm306_vm0, %v261_v9 }
  0x3e   : > { %p1180_p3 = pnand %p1179_p1, %p1371_p4 }
  0x40   : > { %p1181_p5 = pneg %p1180_p3 }
  0xb8   : > { %v319_v12 = vpop.f32.mrf.mxu0  ;;  %v344_v13 = vpop.f32.mrf.mxu1 }
  0xb9   : > { %v1418_v14 = vadd.f32 %v1052_v10, %v319_v12  ;;  %v1420_v15 = vadd.f32 %v1053_v11, %v344_v13 }
  0xbb   : > { %v403_v16 = vmul.f32 0.35355338, %v1420_v15  ;;  %v1425_v17 = vpack.c.bf16 %v1418_v14, %v1418_v14  ;;  %v402_v18 = vmul.f32 0.35355338, %v1418_v14  ;;  %v1430_v19 = vpack.c.bf16 %v1420_v15, %v1420_v15 }
  0xbd   : > { %v420_v21 = vsel %vm415_vm1, %v1425_v17, 0  ;;  %v406_v22 = vpack.c.bf16 %v402_v18, %v402_v18  ;;  %v444_v23 = vsel %vm415_vm1, %v1430_v19, 0  ;;  %v407_v27 = vpack.c.bf16 %v403_v16, %v403_v16 }
  0xbe   : > { %429 = vmatpush.bf16.xpose.msrb.mxu0 %v420_v21  ;;  %453 = vmatpush.bf16.xpose.msrb.mxu1 %v444_v23  ;;  %v608_v4 = vunpack.c.l.b16 %v1425_v17 }
  0xbf   : > { %v369_v25 = vpop.f32.mrf.mxu2  ;;  %v411_v26 = vunpack.c.l.b16 %v406_v22  ;;  %v436_v36 = vunpack.c.l.b16 %v407_v27 }
  0xc0   : > { %v1436_v28 = vadd.f32 %v1054_v20, %v369_v25  ;;  %v321_v29 = vpop.f32.mrf.mxu0  ;;  %v346_v30 = vpop.f32.mrf.mxu1  ;;  %v609_v5 = vpack.c.b16 %v608_v4, %v608_v4 }
  0xc1   : > { %v394_v31 = vpop.f32.mrf.mxu3  ;;  %v412_v32 = vpack.c.b16 %v411_v26, %v411_v26  ;;  %v437_v45 = vpack.c.b16 %v436_v36, %v436_v36 }
  0xc2   : > { %v1438_v33 = vadd.f32 %v1055_v24, %v394_v31  ;;  %v400_v34 = vpack.c.bf16 %v1436_v28, %v1436_v28  ;;  %v404_v35 = vmul.f32 0.35355338, %v1436_v28 }
  0xc3   : > { %413 = vrot.lane.b32.xlu1 %v412_v32, %s1272_s23 }
  0xc4   : > { %v405_v37 = vmul.f32 0.35355338, %v1438_v33  ;;  %v468_v38 = vsel %vm415_vm1, %v400_v34, 0  ;;  %v408_v39 = vpack.c.bf16 %v404_v35, %v404_v35  ;;  %v401_v40 = vpack.c.bf16 %v1438_v33, %v1438_v33 }
  0xc5   : > { %477 = vmatpush.bf16.xpose.msrb.mxu2 %v468_v38  ;;  %v657_v6 = vunpack.c.l.b16 %v400_v34 }
  0xc6   : > { %v460_v41 = vunpack.c.l.b16 %v408_v39  ;;  %v492_v42 = vsel %vm415_vm1, %v401_v40, 0  ;;  %v409_v43 = vpack.c.bf16 %v405_v37, %v405_v37  ;;  %v681_v62 = vunpack.c.l.b16 %v401_v40 }
  0xc7   : > { %v371_v44 = vpop.f32.mrf.mxu2  ;;  %501 = vmatpush.bf16.xpose.msrb.mxu3 %v492_v42  ;;  %v658_v7 = vpack.c.b16 %v657_v6, %v657_v6  ;;  %v633_v39 = vunpack.c.l.b16 %v1430_v19 }
  0xc8   : > { %v461_v46 = vpack.c.b16 %v460_v41, %v460_v41  ;;  %v484_v48 = vunpack.c.l.b16 %v409_v43  ;;  %v682_v63 = vpack.c.b16 %v681_v62, %v681_v62 }
  0xc9   : > { %v396_v47 = vpop.f32.mrf.mxu3  ;;  %v634_v40 = vpack.c.b16 %v633_v39, %v633_v39 }
  0xca   : > { %462 = vrot.lane.b32.xlu0 %v461_v46, %s1272_s23  ;;  %v485_v49 = vpack.c.b16 %v484_v48, %v484_v48 }
  0xcb   : > { %438 = vrot.lane.b32.xlu1 %v437_v45, %s1272_s23 }
  0xd2   : > { %486 = vrot.lane.b32.xlu0 %v485_v49, %s1272_s23  ;;  %s1182_s23 = scalar_lea.hbm %s1579_s4, 64 }
  0xd3   : > { %p1184_p7 = scmp.lt.s32.totalorder %s1182_s23, %s1178_s28 }
  0xd5   : > { %p1185_p8 = por %p1184_p7, %p1183_p12 }
  0xd7   : > { %p1186_p9 = pnand %p1185_p8, %p1181_p5 }
 0x135   : > { %v414_v50 = vpop.permute.xlu1 %413 }
 0x136   : > { %945 = vmatmul.msk.bf16.vlgmr.msrb.gmra.mxu0 %vm415_vm1, %v414_v50 }
 0x13c   : > { %v463_v51 = vpop.permute.xlu0 %462 }
 0x13d   : > { %947 = vmatmul.msk.bf16.vlgmr.msrb.gmra.mxu2 %vm415_vm1, %v463_v51  ;;  %v439_v52 = vpop.permute.xlu1 %438 }
 0x13e   : > { %946 = vmatmul.msk.bf16.vlgmr.msrb.gmra.mxu1 %vm415_vm1, %v439_v52 }
 0x144   : > { %v487_v53 = vpop.permute.xlu0 %486 }
 0x145   : > { %948 = vmatmul.msk.bf16.vlgmr.msrb.gmra.mxu3 %vm415_vm1, %v487_v53 }
 0x1b3   : > { %v431_v54 = vpop.f32.mrf.mxu0 }
 0x1b4   : > { %v507_v55 = vsel %vm415_vm1, %v431_v54, -inf }
 0x1b5   : > { %508 = vmax.xlane.f32.xlu0 %v507_v55 }
 0x1bb   : > { %v433_v56 = vpop.f32.mrf.mxu0  ;;  %v455_v57 = vpop.f32.mrf.mxu1 }
 0x1bc   : > { %v510_v58 = vsel %vm415_vm1, %v455_v57, -inf }
 0x1bd   : > { %511 = vmax.xlane.f32.xlu1 %v510_v58 }
 0x1c0   : > { %v479_v59 = vpop.f32.mrf.mxu2 }
 0x1c1   : > { %v513_v60 = vsel %vm415_vm1, %v479_v59, -inf }
 0x1c2   : > { %514 = vmax.xlane.f32.xlu2 %v513_v60 }
 0x1c3   : > { %v457_v61 = vpop.f32.mrf.mxu1 }
 0x1c8   : > { %v481_v0 = vpop.f32.mrf.mxu2  ;;  %v503_v1 = vpop.f32.mrf.mxu3 }
 0x1c9   : > { %v516_v2 = vsel %vm415_vm1, %v503_v1, -inf  ;;  %683 = vrot.lane.b32.xlu0 %v682_v63, %s1273_s19 }
 0x1ca   : > { %517 = vmax.xlane.f32.xlu2 %v516_v2 }
 0x1d0   : > { %v505_v3 = vpop.f32.mrf.mxu3 }
 0x1d6   : > { %610 = vrot.lane.b32.xlu1 %v609_v5, %s1273_s19 }
 0x1e2   : > { %659 = vrot.lane.b32.xlu2 %v658_v7, %s1273_s19 }
 0x228   : > { %v509_v8 = vpop.xlane.xlu0 %508 }
 0x229   : > { %v519_v9 = vsub.f32 %v431_v54, %v509_v8 }
 0x22b   : > { %v523_v10 = vmul.f32 1.442695, %v519_v9 }
 0x22d   : > { %1056 = vpow2.f32 %v523_v10 }
 0x230   : > { %v512_v11 = vpop.xlane.xlu1 %511 }
 0x231   : > { %v520_v12 = vsub.f32 %v455_v57, %v512_v11 }
 0x233   : > { %v1057_v13 = vpop.eup %1056  ;;  %v525_v16 = vmul.f32 1.442695, %v520_v12 }
 0x234   : > { %v531_v18 = vsel %vm415_vm1, %v1057_v13, 0.0 }
 0x235   : > { %1058 = vpow2.f32 %v525_v16  ;;  %v515_v20 = vpop.xlane.xlu2 %514  ;;  %532 = vadd.xlane.f32.xlu2 %v531_v18 }
 0x236   : > { %v521_v17 = vsub.f32 %v479_v59, %v515_v20 }
 0x238   : > { %v527_v21 = vmul.f32 1.442695, %v521_v17 }
 0x23a   : > { %1060 = vpow2.f32 %v527_v21 }
 0x23b   : > { %v1461_v22 = vpop.eup %1058  ;;  %v684_v23 = vpop.permute.xlu0 %683 }
 0x23c   : > { %v689_v24 = vsel %vm615_vm2, %v684_v23, 0  ;;  %v534_v25 = vsel %vm415_vm1, %v1461_v22, 0.0 }
 0x23d   : > { %v518_v26 = vpop.xlane.xlu2 %517  ;;  %535 = vadd.xlane.f32.xlu2 %v534_v25  ;;  %698 = vmatpush.bf16.msra.mxu3 %v689_v24 }
 0x23e   : > { %v522_v27 = vsub.f32 %v503_v1, %v518_v26 }
 0x240   : > { %v529_v29 = vmul.f32 1.442695, %v522_v27  ;;  %v1466_v30 = vpop.eup %1060 }
 0x241   : > { %v537_v31 = vsel %vm415_vm1, %v1466_v30, 0.0 }
 0x242   : > { %1062 = vpow2.f32 %v529_v29 }
 0x245   : > { %v660_v32 = vpop.permute.xlu2 %659  ;;  %538 = vadd.xlane.f32.xlu2 %v537_v31 }
 0x246   : > { %v665_v34 = vsel %vm615_vm2, %v660_v32, 0 }
 0x247   : > { %674 = vmatpush.bf16.msra.mxu2 %v665_v34 }
 0x248   : > { %v611_v35 = vpop.permute.xlu1 %610  ;;  %v1471_v36 = vpop.eup %1062 }
 0x249   : > { %v617_v37 = vsel %vm615_vm2, %v611_v35, 0  ;;  %v540_v38 = vsel %vm415_vm1, %v1471_v36, 0.0 }
 0x24a   : > { %626 = vmatpush.bf16.msra.mxu0 %v617_v37 }
 0x24d   : > { %541 = vadd.xlane.f32.xlu2 %v540_v38 }
 0x265   : > { %635 = vrot.lane.b32.xlu2 %v634_v40, %s1273_s19 }
 0x2a8   : > { %v533_v41 = vpop.xlane.xlu2 %532 }
 0x2a9   : > { %1064 = vrcp.f32 %v533_v41  ;;  %v554_v46 = vand.u32 2147483648, %v533_v41  ;;  %v552_v48 = vand.u32 2147483647, %v533_v41  ;;  %vm548_vm4 = vweird.f32 %v533_v41 }
 0x2ab   : > { %v555_v19 = vor.u32 1.1754944e-38, %v554_v46  ;;  %vm553_vm6 = vcmp.eq.f32.partialorder %v552_v48, 8.507059e+37 }
 0x2af   : > { %v1065_v42 = vpop.eup %1064 }
 0x2b0   : > { %v544_v43 = vmul.f32 %v1065_v42, %v533_v41  ;;  %v536_v44 = vpop.xlane.xlu2 %535  ;;  %vm549_vm3 = vweird.f32 %v1065_v42 }
 0x2b1   : > { %1066 = vrcp.f32 %v536_v44  ;;  %vm550_vm5 = vmor %vm548_vm4, %vm549_vm3  ;;  %v569_v57 = vand.u32 2147483648, %v536_v44  ;;  %v567_v59 = vand.u32 2147483647, %v536_v44  ;;  %vm563_vm8 = vweird.f32 %v536_v44 }
 0x2b2   : > { %v545_v45 = vsub.f32 1.0, %v544_v43 }
 0x2b3   : > { %v570_v63 = vor.u32 1.1754944e-38, %v569_v57  ;;  %vm568_vm10 = vcmp.eq.f32.partialorder %v567_v59, 8.507059e+37 }
 0x2b4   : > { %v546_v47 = vmul.f32 %v1065_v42, %v545_v45 }
 0x2b6   : > { %v547_v49 = vadd.f32 %v1065_v42, %v546_v47 }
 0x2b7   : > { %v1067_v50 = vpop.eup %1066 }
 0x2b8   : > { %v551_v51 = vsel %vm550_vm5, %v1065_v42, %v547_v49  ;;  %v559_v52 = vmul.f32 %v1067_v50, %v536_v44  ;;  %v539_v53 = vpop.xlane.xlu2 %538  ;;  %vm564_vm7 = vweird.f32 %v1067_v50 }
 0x2b9   : > { %v556_v54 = vsel %vm553_vm6, %v555_v19, %v551_v51  ;;  %1068 = vrcp.f32 %v539_v53  ;;  %vm565_vm9 = vmor %vm563_vm8, %vm564_vm7  ;;  %v584_v6 = vand.u32 2147483648, %v539_v53  ;;  %v582_v8 = vand.u32 2147483647, %v539_v53 }
 0x2ba   : > { %v557_v55 = vmul.f32 %v1057_v13, %v556_v54  ;;  %v560_v56 = vsub.f32 1.0, %v559_v52  ;;  %vm578_vm12 = vweird.f32 %v539_v53 }
 0x2bb   : > { %v585_v11 = vor.u32 1.1754944e-38, %v584_v6  ;;  %vm583_vm14 = vcmp.eq.f32.partialorder %v582_v8, 8.507059e+37 }
 0x2bc   : > { %v561_v58 = vmul.f32 %v1067_v50, %v560_v56  ;;  %v603_v60 = vpack.c.bf16 %v557_v55, %v557_v55  ;;  %729 = vst.msk [vmem:[%s1481_s6] sm:$0xff] %vm415_vm1, %v557_v55 }
 0x2be   : > { %v562_v61 = vadd.f32 %v1067_v50, %v561_v58  ;;  %949 = vmatmul.msk.bf16.vlgmr.msra.gmra.mxu0 %vm415_vm1, %v603_v60 }
 0x2bf   : > { %v1069_v62 = vpop.eup %1068 }
 0x2c0   : > { %v566_v0 = vsel %vm565_vm9, %v1067_v50, %v562_v61  ;;  %v574_v1 = vmul.f32 %v1069_v62, %v539_v53  ;;  %v542_v2 = vpop.xlane.xlu2 %541  ;;  %vm579_vm11 = vweird.f32 %v1069_v62 }
 0x2c1   : > { %v571_v3 = vsel %vm568_vm10, %v570_v63, %v566_v0  ;;  %1070 = vrcp.f32 %v542_v2  ;;  %vm580_vm13 = vmor %vm578_vm12, %vm579_vm11  ;;  %v597_v25 = vand.u32 2147483647, %v542_v2  ;;  %vm593_vm3 = vweird.f32 %v542_v2 }
 0x2c2   : > { %v572_v4 = vmul.f32 %v1461_v22, %v571_v3  ;;  %v575_v5 = vsub.f32 1.0, %v574_v1  ;;  %v599_v22 = vand.u32 2147483648, %v542_v2 }
 0x2c3   : > { %vm598_vm4 = vcmp.eq.f32.partialorder %v597_v25, 8.507059e+37 }
 0x2c4   : > { %v576_v7 = vmul.f32 %v1069_v62, %v575_v5  ;;  %730 = vst.msk [vmem:[%s1481_s6 + $0x8] sm:$0xff] %vm415_vm1, %v572_v4  ;;  %v604_v23 = vpack.c.bf16 %v572_v4, %v572_v4  ;;  %v600_v29 = vor.u32 1.1754944e-38, %v599_v22 }
 0x2c6   : > { %v577_v9 = vadd.f32 %v1069_v62, %v576_v7 }
 0x2c7   : > { %v1071_v10 = vpop.eup %1070 }
 0x2c8   : > { %v581_v12 = vsel %vm580_vm13, %v1069_v62, %v577_v9  ;;  %v589_v13 = vmul.f32 %v1071_v10, %v542_v2  ;;  %v636_v16 = vpop.permute.xlu2 %635  ;;  %vm594_vm15 = vweird.f32 %v1071_v10 }
 0x2c9   : > { %v586_v18 = vsel %vm583_vm14, %v585_v11, %v581_v12  ;;  %v641_v20 = vsel %vm615_vm2, %v636_v16, 0  ;;  %vm595_vm2 = vmor %vm593_vm3, %vm594_vm15 }
 0x2ca   : > { %v587_v17 = vmul.f32 %v1466_v30, %v586_v18  ;;  %v590_v21 = vsub.f32 1.0, %v589_v13  ;;  %650 = vmatpush.bf16.msra.mxu1 %v641_v20 }
 0x2cc   : > { %v591_v24 = vmul.f32 %v1071_v10, %v590_v21  ;;  %v605_v26 = vpack.c.bf16 %v587_v17, %v587_v17  ;;  %731 = vst.msk [vmem:[%s1481_s6 + $0x10] sm:$0xff] %vm415_vm1, %v587_v17 }
 0x2cd   : > { %950 = vmatmul.msk.bf16.vlgmr.msra.gmra.mxu1 %vm415_vm1, %v604_v23 }
 0x2ce   : > { %v592_v27 = vadd.f32 %v1071_v10, %v591_v24  ;;  %951 = vmatmul.msk.bf16.vlgmr.msra.gmra.mxu2 %vm415_vm1, %v605_v26 }
 0x2d0   : > { %v596_v30 = vsel %vm595_vm2, %v1071_v10, %v592_v27 }
 0x2d1   : > { %v601_v31 = vsel %vm598_vm4, %v600_v29, %v596_v30 }
 0x2d2   : > { %v602_v32 = vmul.f32 %v1471_v36, %v601_v31 }
 0x2d4   : > { %v606_v34 = vpack.c.bf16 %v602_v32, %v602_v32  ;;  %732 = vst.msk [vmem:[%s1481_s6 + $0x18] sm:$0xff] %vm415_vm1, %v602_v32 }
 0x2d6   : > { %952 = vmatmul.msk.bf16.vlgmr.msra.gmra.mxu3 %vm415_vm1, %v606_v34 }
 0x33b   : > { %v628_v35 = vpop.f32.mrf.mxu0 }
 0x33c   : > { %708 = vrot.lane.b32.xlu0 %v628_v35, %s1274_s7 }
 0x343   : > { %v630_v37 = vpop.f32.mrf.mxu0 }
 0x34a   : > { %v652_v38 = vpop.f32.mrf.mxu1 }
 0x34b   : > { %710 = vrot.lane.b32.xlu2 %v652_v38, %s1274_s7 }
 0x351   : > { %v676_v36 = vpop.f32.mrf.mxu2 }
 0x352   : > { %712 = vrot.lane.b32.xlu1 %v676_v36, %s1274_s7  ;;  %v654_v39 = vpop.f32.mrf.mxu1 }
 0x353   : > { %1189 = shalt.err (!%p1186_p9)
}
 0x354   : > { %s1275_s11 = smov 128   ;;  %s1276_s12 = smov 8   ;;  %vm724_vm1 = vcmask 326656  }
 0x355   : > { %982 = dma.vmem_to_hbm [thread:$0]  (%p1371_p4), %s769_s8, 512, %s771_s26, %s739_s27, %s1275_s11, %s1275_s11, %s1276_s12  }
 0x356   : > { %s251_s25 = scalar_lea.vmem [#allocation8], %s907_s5  ;;  %s750_s5 = scalar_lea.hbm %s1578_s3, %s969_s9 }
 0x357   : > { %s751_s26 = sshll.u32 %s251_s25, 4  ;;  %s753_s27 = sshll.u32 %s750_s5, 4  ;;  %s752_s26 = int_to_ptr.vmem [resolvable:$true] %s751_s26  ;;  %s754_s27 = int_to_ptr.hbm [resolvable:$true] %s753_s27 }
 0x358   : > { %s734_s14 = scalar_lea.sflag [#allocation4], %s1402_s20  ;;  %s1204_s28 = sshra.s32 %s754_s27, 4  ;;  %s1205_s28 = int_to_ptr.hbm [resolvable:$true] %s1204_s28 }
 0x359   : > { %v678_v40 = vpop.f32.mrf.mxu2  ;;  %v700_v41 = vpop.f32.mrf.mxu3  ;;  %s1206_s29 = scalar_lea.hbm %s1205_s28, 32  ;;  %s1210_s30 = scalar_lea.hbm %s1578_s3, 64 }
 0x35a   : > { %714 = vrot.lane.b32.xlu0 %v700_v41, %s1274_s7  ;;  %p1207_p10 = scmp.ne.s32.totalorder %s1205_s28, %s1206_s29  ;;  %p1211_p0 = scmp.lt.s32.totalorder %s1205_s28, %s1578_s3 }
 0x35b   : > { %p1212_p2 = scmp.lt.s32.totalorder %s1210_s30, %s1206_s29 }
 0x35c   : > { %p1208_p13 = pnand %p1207_p10, %p1371_p4 }
 0x35d   : > { %p1213_p1 = por %p1212_p2, %p1211_p0 }
 0x35e   : > { %p1209_p11 = pneg %p1208_p13 }
 0x360   : > { %p1214_p3 = pnand %p1213_p1, %p1209_p11 }
 0x361   : > { %v702_v42 = vpop.f32.mrf.mxu3 }
 0x3a5   : > { %v711_v43 = vpop.permute.xlu2 %710 }
 0x3a6   : > { %v721_v44 = vsel %vm306_vm0, %v1420_v15, %v711_v43 }
 0x3a7   : > { %726 = vst.msk [vmem:[%s251_s25 + $0x8] sm:$0xff] %vm724_vm1, %v721_v44 }
 0x3ae   : > { %v709_v45 = vpop.permute.xlu0 %708 }
 0x3af   : > { %v720_v46 = vsel %vm306_vm0, %v1418_v14, %v709_v45 }
 0x3b0   : > { %725 = vst.msk [vmem:[%s251_s25] sm:$0xff] %vm724_vm1, %v720_v46 }
 0x3c4   : > { %v713_v47 = vpop.permute.xlu1 %712 }
 0x3c5   : > { %v722_v48 = vsel %vm306_vm0, %v1436_v28, %v713_v47 }
 0x3c6   : > { %727 = vst.msk [vmem:[%s251_s25 + $0x10] sm:$0xff] %vm724_vm1, %v722_v48 }
 0x3cc   : > { %v715_v15 = vpop.permute.xlu0 %714 }
 0x3cd   : > { %v723_v14 = vsel %vm306_vm0, %v1438_v33, %v715_v15 }
 0x3ce   : > { %728 = vst.msk [vmem:[%s251_s25 + $0x18] sm:$0xff] %vm724_vm1, %v723_v14 }
 0x3cf   : > { %1217 = shalt.err (!%p1214_p3)
}
 0x3d0   : > { %981 = dma.vmem_to_hbm [thread:$0]  (%p1371_p4), %s752_s26, 512, %s754_s27, %s734_s14, %s1275_s11, %s1275_s11, %s1276_s12  }
 0x3d1 PF: > { %s785_s20 = sand.u32 1, %s1252_s15   ;;  %p1586_p5 = scmp.ge.s32.totalorder %s1264_s18, 2 }
 0x3d2   : > { %s786_s6 = scalar_lea.sflag [#allocation4], %s785_s20 }
 0x3d3   : > { %p997_p12 = pnand %p1586_p5, %p1375_p6 }
 0x3d5   : > { %p998_p7 = pneg %p997_p12 }
 0x3d7   : > { %1243 = dma.done.wait (%p998_p7), %s786_s6, 512  }
 0x3d8   : > { %1245 = vsyncadd (%p998_p7), %s786_s6, 4294966784  ;;  %s796_s25 = scalar_lea.sflag [#allocation10], %s785_s20 }
 0x3d9   : > { %1247 = dma.done.wait (%p998_p7), %s796_s25, 512  }
 0x3da   : > { %1249 = vsyncadd (%p998_p7), %s796_s25, 4294966784  ;;  %p22_p4 = scmp.ge.s32.totalorder %s1345_s10, 4   ;;  %s1587_s15 = smov %s1256_s16 }
 0x3db   : > { %s1588_s16 = smov %s1260_s17  ;;  %s1589_s17 = smov %s1356_s13 }
 0x3dc   : > { %s1590_s18 = smov %s1345_s10  ;;  %24 = sbr.rel (!%p22_p4) target bundleno = 8 (0x8), region = 102 }
 0x3e1   :  { %802 = vsyncpa [#allocation3], 1 }
 0x3e2   :  { %804 = vsyncpa [#allocation3 + $0x1], 1 }
 0x3e3   :  { %805 = vsyncpa [#allocation6], 1 }
 0x3e4   :  { %806 = vsyncpa [#allocation4], 1 }
 0x3e5   :  { %808 = vsyncpa [#allocation4 + $0x1], 1 }
 0x3e6   :  { %809 = vsyncpa [#allocation10], 1 }
 0x3e7   :  { %811 = vsyncpa [#allocation10 + $0x1], 1 }

</bundles_post_ra>
